<compile_context>
chip_gen: v5e
topology: v5e:2x2
jax: 0.10.0
libtpu: 0.0.40
codegen_flags: <defaults>
</compile_context>

<pallas_src>
import math

import jax
import jax.numpy as jnp
from jax import lax
from jax.experimental import pallas as pl
from jax.experimental.pallas import tpu as pltpu

IN_DIM = 30 * 22 + 4   # 664
H_DIM = 100
OUT_DIM = 18
H_PAD = 128            # hidden 100 -> 128: lane-dense activations / MXU tiles

MAX_TILE_B = 2048                      # ~11 MB double-buffered f32 x tiles
VMEM_LIMIT_BYTES = 32 * 1024 * 1024    # fits v5e/v6e/v7x scoped VMEM


def _gelu_exact(x):
    # PyTorch F.gelu default: 0.5 * x * (1 + erf(x / sqrt(2))).
    # TODO(synk): swap to tanh-approx GELU (EUP slot) only if a bundle dump
    # shows VALU as the saturating unit after the bf16-matmul change.
    return 0.5 * x * (1.0 + lax.erf(x * (1.0 / math.sqrt(2.0))))


def mlp_kernel(x_ref, w1_ref, b1_ref, w2_ref, b2_ref, w3_ref, b3_ref, o_ref):
    # bf16 MXU matmuls, f32 accumulation.
    x = x_ref[...].astype(jnp.bfloat16)

    h = jnp.dot(x, w1_ref[...], preferred_element_type=jnp.float32)
    h = _gelu_exact(h + b1_ref[...])

    h = jnp.dot(h.astype(jnp.bfloat16), w2_ref[...],
                preferred_element_type=jnp.float32)
    h = _gelu_exact(h + b2_ref[...])

    h = jnp.dot(h.astype(jnp.bfloat16), w3_ref[...],
                preferred_element_type=jnp.float32)
    h = _gelu_exact(h + b3_ref[...])          # (tile_b, 18)

    o_ref[...] = h.astype(o_ref.dtype)


def _round_up(n, m):
    return ((n + m - 1) // m) * m


def _choose_tile_b(B):
    """Pick the batch tile: big enough to amortize per-step overhead, small
    enough that the grid has >= 2 steps (v7x megacore) whenever B allows it."""
    if B >= 2 * MAX_TILE_B:
        return MAX_TILE_B
    half = _round_up(-(-B // 2), 16)          # ceil(B/2), rounded to sublanes
    return max(16, min(MAX_TILE_B, half))


def net_forward(x, padded_params):
    """x: (B, 664) f32 (bf16 also accepted). Returns (B, 18) f32."""
    w1, b1, w2, b2, w3, b3 = padded_params
    B = x.shape[0]
    tile_b = _choose_tile_b(B)
    grid = (pl.cdiv(B, tile_b),)              # ragged last block masked by Pallas

    const = lambda i: (0, 0)                  # weights/biases resident in VMEM
    out = pl.pallas_call(
        mlp_kernel,
        out_shape=jax.ShapeDtypeStruct((B, OUT_DIM), jnp.float32),
        grid=grid,
        in_specs=[
            pl.BlockSpec((tile_b, IN_DIM), lambda i: (i, 0)),  # x: streamed tiles
            pl.BlockSpec((IN_DIM, H_PAD), const),              # w1 (bf16)
            pl.BlockSpec((1, H_PAD), const),                   # b1 (f32)
            pl.BlockSpec((H_PAD, H_PAD), const),               # w2 (bf16)
            pl.BlockSpec((1, H_PAD), const),                   # b2 (f32)
            pl.BlockSpec((H_PAD, OUT_DIM), const),             # w3 (bf16)
            pl.BlockSpec((1, OUT_DIM), const),                 # b3 (f32)
        ],
        out_specs=pl.BlockSpec((tile_b, OUT_DIM), lambda i: (i, 0)),
        compiler_params=pltpu.CompilerParams(
            dimension_semantics=("parallel",),   # megacore sharding on v7x
            vmem_limit_bytes=VMEM_LIMIT_BYTES,
        ),
    )(x, w1, b1, w2, b2, w3, b3)
    return out


def init_params(key):
    """nn.Linear default init U(-1/sqrt(fan_in), 1/sqrt(fan_in)); weights stored
    transposed (fan_in, fan_out) so the kernel computes x @ w."""
    ks = jax.random.split(key, 6)

    def linear(kw, kb, fan_in, fan_out):
        bound = 1.0 / math.sqrt(fan_in)
        w = jax.random.uniform(kw, (fan_in, fan_out), jnp.float32, -bound, bound)
        b = jax.random.uniform(kb, (1, fan_out), jnp.float32, -bound, bound)
        return w, b

    w1, b1 = linear(ks[0], ks[1], IN_DIM, H_DIM)
    w2, b2 = linear(ks[2], ks[3], H_DIM, H_DIM)
    w3, b3 = linear(ks[4], ks[5], H_DIM, OUT_DIM)
    return (w1, b1, w2, b2, w3, b3)


def pad_params(params):
    """One-time prep: zero-pad the hidden dim 100->128 (numerically inert:
    padded contraction lanes contribute 0 and GELU(0)=0) and pre-cast weights
    to bf16 for the MXU. Biases stay f32 (added to the f32 accumulator)."""
    w1, b1, w2, b2, w3, b3 = params
    w1p = jnp.zeros((IN_DIM, H_PAD), jnp.float32).at[:, :H_DIM].set(w1).astype(jnp.bfloat16)
    b1p = jnp.zeros((1, H_PAD), jnp.float32).at[:, :H_DIM].set(b1)
    w2p = jnp.zeros((H_PAD, H_PAD), jnp.float32).at[:H_DIM, :H_DIM].set(w2).astype(jnp.bfloat16)
    b2p = jnp.zeros((1, H_PAD), jnp.float32).at[:, :H_DIM].set(b2)
    w3p = jnp.zeros((H_PAD, OUT_DIM), jnp.float32).at[:H_DIM, :].set(w3).astype(jnp.bfloat16)
    b3p = b3
    return (w1p, b1p, w2p, b2p, w3p, b3p)


def net_forward_ref(x, params):
    w1, b1, w2, b2, w3, b3 = params
    h = _gelu_exact(x @ w1 + b1)
    h = _gelu_exact(h @ w2 + b2)
    h = _gelu_exact(h @ w3 + b3)
    return h


if __name__ == "__main__":
    key = jax.random.PRNGKey(0)
    kx, kp = jax.random.split(key)

    B = 4
    x = jax.random.normal(kx, (B, IN_DIM), jnp.float32)
    params = init_params(kp)
    padded = pad_params(params)

    out = jax.block_until_ready(net_forward(x, padded))
    ref = net_forward_ref(x, params)

    assert out.shape == (B, OUT_DIM), out.shape
    assert bool(jnp.all(jnp.isfinite(out))), "non-finite output"
    # bf16 MXU operands with f32 accumulation: small deviation vs f32 reference.
    assert jnp.allclose(out, ref, atol=3e-2, rtol=3e-2), (
        "mismatch vs reference, max abs err = "
        + str(float(jnp.max(jnp.abs(out - ref)))))

    print("KERNEL_OK")
</pallas_src>

<mosaic_0001>
module attributes {stable_mosaic.version = 11 : i64} {
  func.func @mlp_kernel(%arg0: i32, %arg1: memref<16x664xf32, #tpu.memory_space<vmem>>, %arg2: memref<664x128xbf16, #tpu.memory_space<vmem>>, %arg3: memref<1x128xf32, #tpu.memory_space<vmem>>, %arg4: memref<128x128xbf16, #tpu.memory_space<vmem>>, %arg5: memref<1x128xf32, #tpu.memory_space<vmem>>, %arg6: memref<128x18xbf16, #tpu.memory_space<vmem>>, %arg7: memref<1x18xf32, #tpu.memory_space<vmem>>, %arg8: memref<16x18xf32, #tpu.memory_space<vmem>>) attributes {dimension_semantics = [#tpu.dimension_semantics<parallel>], iteration_bounds = array<i64: 1>, scalar_prefetch = 0 : i64, scratch_operands = 0 : i64, tpu.core_type = #tpu.core_type<tc>, window_params = [{transform_indices = @transform_0, window_bounds = array<i64: 16, 664>}, {pipeline_mode = #tpu.pipeline_mode<synchronous>, transform_indices = @transform_1, window_bounds = array<i64: 664, 128>}, {pipeline_mode = #tpu.pipeline_mode<synchronous>, transform_indices = @transform_2, window_bounds = array<i64: 1, 128>}, {pipeline_mode = #tpu.pipeline_mode<synchronous>, transform_indices = @transform_3, window_bounds = array<i64: 128, 128>}, {pipeline_mode = #tpu.pipeline_mode<synchronous>, transform_indices = @transform_4, window_bounds = array<i64: 1, 128>}, {pipeline_mode = #tpu.pipeline_mode<synchronous>, transform_indices = @transform_5, window_bounds = array<i64: 128, 18>}, {pipeline_mode = #tpu.pipeline_mode<synchronous>, transform_indices = @transform_6, window_bounds = array<i64: 1, 18>}, {transform_indices = @transform_7, window_bounds = array<i64: 16, 18>}]} {
    %c0 = arith.constant 0 : index
    %c0_0 = arith.constant 0 : index
    %0 = vector.load %arg1[%c0, %c0_0] : memref<16x664xf32, #tpu.memory_space<vmem>>, vector<16x664xf32>
    %1 = arith.truncf %0 : vector<16x664xf32> to vector<16x664xbf16>
    %c0_1 = arith.constant 0 : index
    %c0_2 = arith.constant 0 : index
    %2 = vector.load %arg2[%c0_1, %c0_2] : memref<664x128xbf16, #tpu.memory_space<vmem>>, vector<664x128xbf16>
    %cst = arith.constant dense<0.000000e+00> : vector<16x128xf32>
    %3 = tpu.matmul %1, %2, %cst {dimension_numbers = #tpu.dot_dimension_numbers<[1], [0], [0], [1], [0, 0, 1, 1], [], []>} : vector<16x664xbf16>, vector<664x128xbf16>, vector<16x128xf32> -> vector<16x128xf32>
    %c0_3 = arith.constant 0 : index
    %c0_4 = arith.constant 0 : index
    %4 = vector.load %arg3[%c0_3, %c0_4] : memref<1x128xf32, #tpu.memory_space<vmem>>, vector<1x128xf32>
    %5 = vector.broadcast %4 : vector<1x128xf32> to vector<16x128xf32>
    %6 = arith.addf %3, %5 : vector<16x128xf32>
    %cst_5 = arith.constant 5.000000e-01 : f32
    %7 = vector.broadcast %cst_5 : f32 to vector<16x128xf32>
    %8 = arith.mulf %7, %6 : vector<16x128xf32>
    %cst_6 = arith.constant 0.707106769 : f32
    %9 = vector.broadcast %cst_6 : f32 to vector<16x128xf32>
    %10 = arith.mulf %6, %9 : vector<16x128xf32>
    %11 = math.erf %10 : vector<16x128xf32>
    %cst_7 = arith.constant 1.000000e+00 : f32
    %12 = vector.broadcast %cst_7 : f32 to vector<16x128xf32>
    %13 = arith.addf %12, %11 : vector<16x128xf32>
    %14 = arith.mulf %8, %13 : vector<16x128xf32>
    %15 = arith.truncf %14 : vector<16x128xf32> to vector<16x128xbf16>
    %c0_8 = arith.constant 0 : index
    %c0_9 = arith.constant 0 : index
    %16 = vector.load %arg4[%c0_8, %c0_9] : memref<128x128xbf16, #tpu.memory_space<vmem>>, vector<128x128xbf16>
    %cst_10 = arith.constant dense<0.000000e+00> : vector<16x128xf32>
    %17 = tpu.matmul %15, %16, %cst_10 {dimension_numbers = #tpu.dot_dimension_numbers<[1], [0], [0], [1], [0, 0, 1, 1], [], []>} : vector<16x128xbf16>, vector<128x128xbf16>, vector<16x128xf32> -> vector<16x128xf32>
    %c0_11 = arith.constant 0 : index
    %c0_12 = arith.constant 0 : index
    %18 = vector.load %arg5[%c0_11, %c0_12] : memref<1x128xf32, #tpu.memory_space<vmem>>, vector<1x128xf32>
    %19 = vector.broadcast %18 : vector<1x128xf32> to vector<16x128xf32>
    %20 = arith.addf %17, %19 : vector<16x128xf32>
    %cst_13 = arith.constant 5.000000e-01 : f32
    %21 = vector.broadcast %cst_13 : f32 to vector<16x128xf32>
    %22 = arith.mulf %21, %20 : vector<16x128xf32>
    %cst_14 = arith.constant 0.707106769 : f32
    %23 = vector.broadcast %cst_14 : f32 to vector<16x128xf32>
    %24 = arith.mulf %20, %23 : vector<16x128xf32>
    %25 = math.erf %24 : vector<16x128xf32>
    %cst_15 = arith.constant 1.000000e+00 : f32
    %26 = vector.broadcast %cst_15 : f32 to vector<16x128xf32>
    %27 = arith.addf %26, %25 : vector<16x128xf32>
    %28 = arith.mulf %22, %27 : vector<16x128xf32>
    %29 = arith.truncf %28 : vector<16x128xf32> to vector<16x128xbf16>
    %c0_16 = arith.constant 0 : index
    %c0_17 = arith.constant 0 : index
    %30 = vector.load %arg6[%c0_16, %c0_17] : memref<128x18xbf16, #tpu.memory_space<vmem>>, vector<128x18xbf16>
    %cst_18 = arith.constant dense<0.000000e+00> : vector<16x18xf32>
    %31 = tpu.matmul %29, %30, %cst_18 {dimension_numbers = #tpu.dot_dimension_numbers<[1], [0], [0], [1], [0, 0, 1, 1], [], []>} : vector<16x128xbf16>, vector<128x18xbf16>, vector<16x18xf32> -> vector<16x18xf32>
    %c0_19 = arith.constant 0 : index
    %c0_20 = arith.constant 0 : index
    %32 = vector.load %arg7[%c0_19, %c0_20] : memref<1x18xf32, #tpu.memory_space<vmem>>, vector<1x18xf32>
    %33 = vector.broadcast %32 : vector<1x18xf32> to vector<16x18xf32>
    %34 = arith.addf %31, %33 : vector<16x18xf32>
    %cst_21 = arith.constant 5.000000e-01 : f32
    %35 = vector.broadcast %cst_21 : f32 to vector<16x18xf32>
    %36 = arith.mulf %35, %34 : vector<16x18xf32>
    %cst_22 = arith.constant 0.707106769 : f32
    %37 = vector.broadcast %cst_22 : f32 to vector<16x18xf32>
    %38 = arith.mulf %34, %37 : vector<16x18xf32>
    %39 = math.erf %38 : vector<16x18xf32>
    %cst_23 = arith.constant 1.000000e+00 : f32
    %40 = vector.broadcast %cst_23 : f32 to vector<16x18xf32>
    %41 = arith.addf %40, %39 : vector<16x18xf32>
    %42 = arith.mulf %36, %41 : vector<16x18xf32>
    %c0_24 = arith.constant 0 : index
    %c0_25 = arith.constant 0 : index
    %43 = vector.load %arg8[%c0_24, %c0_25] : memref<16x18xf32, #tpu.memory_space<vmem>>, vector<16x18xf32>
    tpu.vector_store %arg8[%c0_24, %c0_25], %42 {strides = array<i32>} : memref<16x18xf32, #tpu.memory_space<vmem>>, vector<16x18xf32>,
    return
  }
  func.func @transform_0(%arg0: i32) -> (i32, i32) {
    %c0_i32 = arith.constant 0 : i32
    %c0_i32_0 = arith.constant 0 : i32
    return %arg0, %c0_i32 : i32, i32
  }
  func.func @transform_1(%arg0: i32) -> (i32, i32) {
    %c0_i32 = arith.constant 0 : i32
    %c0_i32_0 = arith.constant 0 : i32
    %c0_i32_1 = arith.constant 0 : i32
    return %c0_i32, %c0_i32_0 : i32, i32
  }
  func.func @transform_2(%arg0: i32) -> (i32, i32) {
    %c0_i32 = arith.constant 0 : i32
    %c0_i32_0 = arith.constant 0 : i32
    %c0_i32_1 = arith.constant 0 : i32
    return %c0_i32, %c0_i32_0 : i32, i32
  }
  func.func @transform_3(%arg0: i32) -> (i32, i32) {
    %c0_i32 = arith.constant 0 : i32
    %c0_i32_0 = arith.constant 0 : i32
    %c0_i32_1 = arith.constant 0 : i32
    return %c0_i32, %c0_i32_0 : i32, i32
  }
  func.func @transform_4(%arg0: i32) -> (i32, i32) {
    %c0_i32 = arith.constant 0 : i32
    %c0_i32_0 = arith.constant 0 : i32
    %c0_i32_1 = arith.constant 0 : i32
    return %c0_i32, %c0_i32_0 : i32, i32
  }
  func.func @transform_5(%arg0: i32) -> (i32, i32) {
    %c0_i32 = arith.constant 0 : i32
    %c0_i32_0 = arith.constant 0 : i32
    %c0_i32_1 = arith.constant 0 : i32
    return %c0_i32, %c0_i32_0 : i32, i32
  }
  func.func @transform_6(%arg0: i32) -> (i32, i32) {
    %c0_i32 = arith.constant 0 : i32
    %c0_i32_0 = arith.constant 0 : i32
    %c0_i32_1 = arith.constant 0 : i32
    return %c0_i32, %c0_i32_0 : i32, i32
  }
  func.func @transform_7(%arg0: i32) -> (i32, i32) {
    %c0_i32 = arith.constant 0 : i32
    %c0_i32_0 = arith.constant 0 : i32
    return %arg0, %c0_i32 : i32, i32
  }
}

</mosaic_0001>

<bundles_post_ra>
// kernel: tpu_custom_call.1
= control target key start
LH: loop header
LB: loop body
LE: loop exit
PB: predicated region body
PF: predicated region fallthrough
CT: control target
= control target key end

     0   :  { %12 = vsyncpa [#allocation3], 0  ;;  %s1576_s0 = inlined_call_operand.hbm [shape: f32[4,664], index: 0, kind: input, shape index: {}]   ;;  %s1577_s1 = inlined_call_operand.hbm [shape: bf16[664,128], index: 1, kind: input, shape index: {}]   ;;  %s1578_s2 = inlined_call_operand.vmem [shape: f32[1,128], index: 2, kind: input, shape index: {}]   ;;  %s1579_s3 = inlined_call_operand.vmem [shape: bf16[128,128], index: 3, kind: input, shape index: {}]   ;;  %s1580_s4 = inlined_call_operand.vmem [shape: f32[1,128], index: 4, kind: input, shape index: {}]   ;;  %s1581_s5 = inlined_call_operand.vmem [shape: bf16[128,18], index: 5, kind: input, shape index: {}]   ;;  %s1582_s6 = inlined_call_operand.vmem [shape: f32[1,18], index: 6, kind: input, shape index: {}]   ;;  %s1583_s7 = inlined_call_operand.hbm [shape: f32[4,18], index: 7, kind: output, shape index: {}]  }
   0x1   :  { %13 = vsyncpa [#allocation6], 0 }
   0x2   :  { %14 = vsyncpa [#allocation4], 0 }
   0x3   :  { %18 = vsyncadd [#allocation3], 1152  ;;  %s19_s26 = sshll.u32 %s1576_s0, 4  ;;  %s1406_s27 = smov [#allocation2]   ;;  %s20_s26 = int_to_ptr.hbm [resolvable:$true] %s19_s26 }
   0x4   :  { %s21_s28 = sshll.u32 %s1406_s27, 4  ;;  %s32_s8 = sshll.u32 %s1577_s1, 4  ;;  %s22_s28 = int_to_ptr.vmem [resolvable:$true] %s21_s28  ;;  %s33_s8 = int_to_ptr.hbm [resolvable:$true] %s32_s8 }
   0x5   :  { %s1407_s9 = smov 384   ;;  %s1408_s10 = smov 24  }
   0x6   :  { %27 = dma.hbm_to_vmem [thread:$0]  %s20_s26, 384, %s22_s28, [#allocation3], %s1407_s9, %s1407_s9, %s1408_s10  }
   0x7   :  { %s1409_s11 = smov [#allocation5]   ;;  %s1410_s13 = smov 64  }
   0x8   :  { %s34_s12 = sshll.u32 %s1409_s11, 4  ;;  %s1411_s14 = smov 4   ;;  %s35_s12 = int_to_ptr.vmem [resolvable:$true] %s34_s12 }
   0x9   :  { %40 = dma.hbm_to_vmem [thread:$0]  %s33_s8, 5312, %s35_s12, [#allocation6], %s1410_s13, %s1410_s13, %s1411_s14  }
   0xa   :  { %1400 = dma.done.wait [#allocation3], 1536  }
   0xb   :  { %1401 = vsyncadd [#allocation3], 4294965760 }
   0xc   :  { %1402 = dma.done.wait [#allocation6], 5312  }
   0xd   :  { %1403 = vsyncadd [#allocation6], 4294961984  ;;  %v1256_v0 = vld [vmem:[#allocation5 + $0x38] sm:$0xff]  ;;  %v1255_v4 = vld [vmem:[#allocation5 + $0x30] sm:$0xff]  ;;  %vm473_vm0 = vcmask 1043456   ;;  %vm469_vm1 = vcmask 195584  }
   0xe   :  { %v1272_v1 = vld [vmem:[#allocation5 + $0xb8] sm:$0xff]  ;;  %477 = vmatpush.bf16.msra.mxu0 %v1256_v0  ;;  %v1271_v5 = vld [vmem:[#allocation5 + $0xb0] sm:$0xff]  ;;  %v1254_v8 = vld [vmem:[#allocation5 + $0x28] sm:$0xff] }
   0xf   :  { %v1280_v2 = vld [vmem:[#allocation5 + $0xf8] sm:$0xff]  ;;  %505 = vmatpush.bf16.msra.mxu2 %v1272_v1  ;;  %v1279_v6 = vld [vmem:[#allocation5 + $0xf0] sm:$0xff]  ;;  %v1270_v9 = vld [vmem:[#allocation5 + $0xa8] sm:$0xff] }
  0x10   :  { %v1264_v3 = vld [vmem:[#allocation5 + $0x78] sm:$0xff]  ;;  %519 = vmatpush.bf16.msra.mxu3 %v1280_v2  ;;  %v1263_v7 = vld [vmem:[#allocation5 + $0x70] sm:$0xff]  ;;  %v1278_v10 = vld [vmem:[#allocation5 + $0xe8] sm:$0xff] }
  0x11   :  { %491 = vmatpush.bf16.msra.mxu1 %v1264_v3  ;;  %v1262_v11 = vld [vmem:[#allocation5 + $0x68] sm:$0xff]  ;;  %v1253_v12 = vld [vmem:[#allocation5 + $0x20] sm:$0xff]  ;;  %v63_v18 = vld [vmem:[#allocation2 + $0x18] sm:$0xff] }
  0x12   :  { %478 = vmatpush.bf16.msra.mxu0 %v1255_v4  ;;  %v1269_v13 = vld [vmem:[#allocation5 + $0xa0] sm:$0xff]  ;;  %v61_v17 = vld [vmem:[#allocation2 + $0x8] sm:$0xff]  ;;  %86 = vst [vmem:[#allocation1 + $0x1] ss:$2 sm:$0xff] %v63_v18  ;;  %v66_v20 = vld [vmem:[#allocation2 + $0x30] sm:$0xff] }
  0x13   :  { %506 = vmatpush.bf16.msra.mxu2 %v1271_v5  ;;  %v1277_v14 = vld [vmem:[#allocation5 + $0xe0] sm:$0xff]  ;;  %v1252_v21 = vld [vmem:[#allocation5 + $0x18] sm:$0xff]  ;;  %88 = vst [vmem:[#allocation1 + $0x10] ss:$2 sm:$0xff] %v61_v17  ;;  %v69_v23 = vld [vmem:[#allocation2 + $0x48] sm:$0xff] }
  0x14   :  { %520 = vmatpush.bf16.msra.mxu3 %v1279_v6  ;;  %v1261_v15 = vld [vmem:[#allocation5 + $0x60] sm:$0xff]  ;;  %v1268_v22 = vld [vmem:[#allocation5 + $0x98] sm:$0xff]  ;;  %v1251_v26 = vld [vmem:[#allocation5 + $0x10] sm:$0xff]  ;;  %96 = vst [vmem:[#allocation1 + $0x30] ss:$2 sm:$0xff] %v66_v20 }
  0x15   :  { %492 = vmatpush.bf16.msra.mxu1 %v1263_v7  ;;  %v60_v16 = vld [vmem:[#allocation2] sm:$0xff]  ;;  %v1276_v24 = vld [vmem:[#allocation5 + $0xd8] sm:$0xff]  ;;  %v1267_v27 = vld [vmem:[#allocation5 + $0x90] sm:$0xff]  ;;  %98 = vst [vmem:[#allocation1 + $0x31] ss:$2 sm:$0xff] %v69_v23 }
  0x16   :  { %479 = vmatpush.bf16.msra.mxu0 %v1254_v8  ;;  %v64_v19 = vld [vmem:[#allocation2 + $0x20] sm:$0xff]  ;;  %84 = vst [vmem:[#allocation1] ss:$2 sm:$0xff] %v60_v16  ;;  %v1260_v25 = vld [vmem:[#allocation5 + $0x58] sm:$0xff]  ;;  %v62_v28 = vld [vmem:[#allocation2 + $0x10] sm:$0xff] }
  0x17   :  { %507 = vmatpush.bf16.msra.mxu2 %v1270_v9  ;;  %90 = vst [vmem:[#allocation1 + $0x11] ss:$2 sm:$0xff] %v64_v19  ;;  %v65_v29 = vld [vmem:[#allocation2 + $0x28] sm:$0xff]  ;;  %v1275_v30 = vld [vmem:[#allocation5 + $0xd0] sm:$0xff]  ;;  %v67_v31 = vld [vmem:[#allocation2 + $0x38] sm:$0xff] }
  0x18   :  { %521 = vmatpush.bf16.msra.mxu3 %v1278_v10  ;;  %92 = vst [vmem:[#allocation1 + $0x20] ss:$2 sm:$0xff] %v62_v28  ;;  %v1259_v32 = vld [vmem:[#allocation5 + $0x50] sm:$0xff]  ;;  %v215_v34 = vld [vmem:[#allocation5 + $0x148] sm:$0xf]  ;;  %v68_v39 = vld [vmem:[#allocation2 + $0x40] sm:$0xff] }
  0x19   :  { %493 = vmatpush.bf16.msra.mxu1 %v1262_v11  ;;  %v70_v33 = vld [vmem:[#allocation2 + $0x50] sm:$0xff]  ;;  %94 = vst [vmem:[#allocation1 + $0x21] ss:$2 sm:$0xff] %v65_v29  ;;  %v1250_v37 = vld [vmem:[#allocation5 + $0x8] sm:$0xff]  ;;  %v71_v42 = vld [vmem:[#allocation2 + $0x58] sm:$0xff]  ;;  %v385_v45 = vunpack.c.l.b16 %v215_v34 }
  0x1a   :  { %480 = vmatpush.bf16.msra.mxu0 %v1253_v12  ;;  %v1266_v38 = vld [vmem:[#allocation5 + $0x88] sm:$0xff]  ;;  %v1249_v46 = vld [vmem:[#allocation5] sm:$0xff]  ;;  %v1288_v49 = vld [vmem:[#allocation5 + $0x138] sm:$0xff] }
  0x1b   :  { %508 = vmatpush.bf16.msra.mxu2 %v1269_v13  ;;  %v1274_v40 = vld [vmem:[#allocation5 + $0xc8] sm:$0xff]  ;;  %v1265_v47 = vld [vmem:[#allocation5 + $0x80] sm:$0xff]  ;;  %v427_v51 = vpack.c.b16 %v385_v45, %v385_v45  ;;  %v1287_v59 = vld [vmem:[#allocation5 + $0x130] sm:$0xff] }
  0x1c   :  { %522 = vmatpush.bf16.msra.mxu3 %v1277_v14  ;;  %v1258_v41 = vld [vmem:[#allocation5 + $0x48] sm:$0xff]  ;;  %v1273_v50 = vld [vmem:[#allocation5 + $0xc0] sm:$0xff]  ;;  %v106_v53 = vld.sshfl [vmem:[#allocation1 + $0x38] sm:$0xff pattern:$0x75316420] }
  0x1d   :  { %494 = vmatpush.bf16.msra.mxu1 %v1261_v15  ;;  %v99_v35 = vld.sshfl [vmem:[#allocation1] sm:$0xff pattern:$0x75316420]  ;;  %v100_v36 = vld.sshfl [vmem:[#allocation1 + $0x8] sm:$0xff pattern:$0x75316420] }
  0x1e   :  { %481 = vmatpush.bf16.msra.mxu0 %v1252_v21  ;;  %107 = vst [vmem:[#allocation1] ss:$2 sm:$0xff] %v67_v31  ;;  %v101_v43 = vld.sshfl [vmem:[#allocation1 + $0x10] sm:$0xff pattern:$0x75316420]  ;;  %v1257_v52 = vld [vmem:[#allocation5 + $0x40] sm:$0xff]  ;;  %v128_v60 = vpack.c.bf16 %v106_v53, %v100_v36 }
  0x1f   :  { %509 = vmatpush.bf16.msra.mxu2 %v1268_v22  ;;  %108 = vst [vmem:[#allocation1 + $0x1] ss:$2 sm:$0xff] %v70_v33  ;;  %v102_v44 = vld.sshfl [vmem:[#allocation1 + $0x18] sm:$0xff pattern:$0x75316420]  ;;  %v475_v61 = vsel %vm473_vm0, %v427_v51, 0 }
  0x20   :  { %523 = vmatpush.bf16.msra.mxu3 %v1276_v24  ;;  %109 = vst [vmem:[#allocation1 + $0x10] ss:$2 sm:$0xff] %v68_v39  ;;  %v105_v48 = vld.sshfl [vmem:[#allocation1 + $0x30] sm:$0xff pattern:$0x75316420]  ;;  %v1289_v62 = vld [vmem:[#allocation5 + $0x140] sm:$0xff] }
  0x21   :  { %495 = vmatpush.bf16.msra.mxu1 %v1260_v25  ;;  %110 = vst [vmem:[#allocation1 + $0x11] ss:$2 sm:$0xff] %v71_v42  ;;  %v127_v55 = vpack.c.bf16 %v105_v48, %v99_v35  ;;  %v1286_v63 = vld [vmem:[#allocation5 + $0x128] sm:$0xff]  ;;  %v1285_v0 = vld [vmem:[#allocation5 + $0x120] sm:$0xff]  ;;  %v1284_v1 = vld [vmem:[#allocation5 + $0x118] sm:$0xff] }
  0x22   :  { %482 = vmatpush.bf16.msra.mxu0 %v1251_v26  ;;  %v104_v2 = vld.sshfl [vmem:[#allocation1 + $0x28] sm:$0xff pattern:$0x75316420]  ;;  %v1283_v4 = vld [vmem:[#allocation5 + $0x110] sm:$0xff]  ;;  %v1282_v6 = vld [vmem:[#allocation5 + $0x108] sm:$0xff] }
  0x23   :  { %510 = vmatpush.bf16.msra.mxu2 %v1267_v27  ;;  %v1281_v7 = vld [vmem:[#allocation5 + $0x100] sm:$0xff]  ;;  %v103_v8 = vld.sshfl [vmem:[#allocation1 + $0x20] sm:$0xff pattern:$0x75316420]  ;;  %v1296_v35 = vld [vmem:[%s1579_s3 + $0x30] sm:$0xff] }
  0x24   :  { %524 = vmatpush.bf16.msra.mxu3 %v1275_v30  ;;  %v1313_v13 = vld [vmem:[%s1578_s2] ss:$0 sm:$0xff]  ;;  %v1297_v30 = vld [vmem:[%s1579_s3 + $0x38] sm:$0xff] }
  0x25   :  { %496 = vmatpush.bf16.msra.mxu1 %v1259_v32  ;;  %v1294_v48 = vld [vmem:[%s1579_s3 + $0x20] sm:$0xff] }
  0x26   :  { %483 = vmatpush.bf16.msra.mxu0 %v1250_v37  ;;  %v111_v54 = vld.sshfl [vmem:[#allocation1] sm:$0xff pattern:$0x75316420]  ;;  %v112_v56 = vld.sshfl [vmem:[#allocation1 + $0x8] sm:$0xff pattern:$0x75316420] }
  0x27   :  { %511 = vmatpush.bf16.msra.mxu2 %v1266_v38  ;;  %v129_v57 = vpack.c.bf16 %v111_v54, %v101_v43  ;;  %v130_v58 = vpack.c.bf16 %v112_v56, %v102_v44  ;;  %v1295_v43 = vld [vmem:[%s1579_s3 + $0x28] sm:$0xff]  ;;  %v1293_v54 = vld [vmem:[%s1579_s3 + $0x18] sm:$0xff] }
  0x28   :  { %525 = vmatpush.bf16.msra.mxu3 %v1274_v40  ;;  %v114_v3 = vld.sshfl [vmem:[#allocation1 + $0x18] sm:$0xff pattern:$0x75316420]  ;;  %v113_v9 = vld.sshfl [vmem:[#allocation1 + $0x10] sm:$0xff pattern:$0x75316420] }
  0x29   :  { %497 = vmatpush.bf16.msra.mxu1 %v1258_v41  ;;  %v132_v5 = vpack.c.bf16 %v114_v3, %v104_v2  ;;  %v131_v10 = vpack.c.bf16 %v113_v9, %v103_v8  ;;  %v1291_v3 = vld [vmem:[%s1579_s3 + $0x8] sm:$0xff] }
  0x2a   :  { %484 = vmatpush.bf16.msra.mxu0 %v1249_v46 }
  0x2b   :  { %512 = vmatpush.bf16.msra.mxu2 %v1265_v47 }
  0x2c   :  { %526 = vmatpush.bf16.msra.mxu3 %v1273_v50 }
  0x2d   :  { %498 = vmatpush.bf16.msra.mxu1 %v1257_v52  ;;  %485 = vmatmul.bf16.vlgmr.msra.gmra.mxu0 %v127_v55 }
  0x2e   :  { %533 = vmatpush.bf16.msrb.mxu0 %v1288_v49  ;;  %513 = vmatmul.bf16.vlgmr.msra.gmra.mxu2 %v129_v57 }
  0x2f   :  { %527 = vmatmul.bf16.vlgmr.msra.gmra.mxu3 %v130_v58  ;;  %718 = vmatpush.bf16.msrb.mxu2 %v1297_v30 }
  0x30   :  { %499 = vmatmul.bf16.vlgmr.msra.gmra.mxu1 %v128_v60 }
  0x31   :  { %553 = vmatpush.bf16.msrb.mxu1 %v475_v61 }
  0x32   :  { %534 = vmatpush.bf16.msrb.mxu0 %v1287_v59 }
  0x33   :  { %719 = vmatpush.bf16.msrb.mxu2 %v1296_v35 }
  0x35   :  { %554 = vmatpush.bf16.msrb.mxu1 %v1289_v62  ;;  %v1292_v62 = vld [vmem:[%s1579_s3 + $0x10] sm:$0xff] }
  0x36   :  { %535 = vmatpush.bf16.msrb.mxu0 %v1286_v63 }
  0x37   :  { %720 = vmatpush.bf16.msrb.mxu2 %v1295_v43 }
  0x3a   :  { %536 = vmatpush.bf16.msrb.mxu0 %v1285_v0 }
  0x3b   :  { %721 = vmatpush.bf16.msrb.mxu2 %v1294_v48 }
  0x3e   :  { %537 = vmatpush.bf16.msrb.mxu0 %v1284_v1 }
  0x3f   :  { %722 = vmatpush.bf16.msrb.mxu2 %v1293_v54 }
  0x40   :  { %1178 = vmatmul.msk.bf16.vlgmr.msrb.gmra.mxu1 %vm469_vm1, %v132_v5 }
  0x42   :  { %538 = vmatpush.bf16.msrb.mxu0 %v1283_v4 }
  0x43   :  { %723 = vmatpush.bf16.msrb.mxu2 %v1292_v62 }
  0x46   :  { %539 = vmatpush.bf16.msrb.mxu0 %v1282_v6 }
  0x47   :  { %724 = vmatpush.bf16.msrb.mxu2 %v1291_v3 }
  0x4a   :  { %540 = vmatpush.bf16.msrb.mxu0 %v1281_v7 }
  0x4d   :  { %541 = vmatmul.bf16.vlgmr.msrb.gmra.mxu0 %v131_v10  ;;  %v1290_v10 = vld [vmem:[%s1579_s3] sm:$0xff] }
  0x4e   :  { %725 = vmatpush.bf16.msrb.mxu2 %v1290_v10 }
  0xaa   :  { %v486_v12 = vpop.f32.mrf.mxu0 }
  0xab   :  { %v487_v14 = vadd.f32 %v1313_v13, %v486_v12 }
  0xad   :  { %v500_v11 = vpop.f32.mrf.mxu1 }
  0xae   :  { %v501_v17 = vadd.f32 %v500_v11, %v487_v14 }
  0xb1   :  { %v514_v15 = vpop.f32.mrf.mxu2 }
  0xb2   :  { %v488_v18 = vpop.f32.mrf.mxu0  ;;  %v528_v19 = vpop.f32.mrf.mxu3  ;;  %v515_v20 = vadd.f32 %v514_v15, %v501_v17 }
  0xb3   :  { %v489_v21 = vadd.f32 %v1313_v13, %v488_v18 }
  0xb4   :  { %v529_v22 = vadd.f32 %v528_v19, %v515_v20 }
  0xb5   :  { %v502_v16 = vpop.f32.mrf.mxu1 }
  0xb6   :  { %v503_v23 = vadd.f32 %v502_v16, %v489_v21 }
  0xb9   :  { %v516_v24 = vpop.f32.mrf.mxu2 }
  0xba   :  { %v517_v28 = vadd.f32 %v516_v24, %v503_v23  ;;  %v530_v31 = vpop.f32.mrf.mxu3 }
  0xbc   :  { %v531_v33 = vadd.f32 %v530_v31, %v517_v28 }
  0xbd   :  { %v556_v25 = vpop.f32.mrf.mxu1 }
  0xc5   :  { %v558_v39 = vpop.f32.mrf.mxu1 }
  0xca   :  { %v542_v26 = vpop.f32.mrf.mxu0 }
  0xcb   :  { %v543_v27 = vadd.f32 %v542_v26, %v529_v22 }
  0xcd   :  { %v1465_v29 = vadd.f32 %v556_v25, %v543_v27 }
  0xcf   :  { %v1471_v32 = vmul.f32 0.70710677, %v1465_v29 }
  0xd1   :  { %v565_v34 = vmul.f32 %v1471_v32, %v1471_v32 }
  0xd2   :  { %v544_v36 = vpop.f32.mrf.mxu0 }
  0xd3   :  { %v566_v37 = vmin.f32 %v565_v34, 16.0  ;;  %v545_v38 = vadd.f32 %v544_v36, %v531_v33 }
  0xd5   :  { %v567_v40 = vmul.f32 2.1237322e-06, %v566_v37  ;;  %v578_v41 = vmul.f32 3.8918573e-05, %v566_v37  ;;  %v1478_v42 = vadd.f32 %v558_v39, %v545_v38 }
  0xd7   :  { %v568_v44 = vadd.f32 0.00028619796, %v567_v40  ;;  %v579_v45 = vadd.f32 0.001143296, %v578_v41  ;;  %v1484_v46 = vmul.f32 0.70710677, %v1478_v42 }
  0xd9   :  { %v580_v47 = vmul.f32 %v579_v45, %v566_v37  ;;  %v605_v49 = vmul.f32 %v1484_v46, %v1484_v46  ;;  %v569_v50 = vmul.f32 %v568_v44, %v566_v37 }
  0xdb   :  { %v581_v51 = vadd.f32 0.014752088, %v580_v47  ;;  %v606_v52 = vmin.f32 %v605_v49, 16.0  ;;  %v570_v57 = vadd.f32 0.0036580483, %v569_v50 }
  0xdd   :  { %v582_v53 = vmul.f32 %v581_v51, %v566_v37  ;;  %v607_v55 = vmul.f32 2.1237322e-06, %v606_v52  ;;  %v618_v56 = vmul.f32 3.8918573e-05, %v606_v52  ;;  %v571_v1 = vmul.f32 %v570_v57, %v566_v37 }
  0xde   :  { %v562_v57 = vmul.f32 0.5, %v1478_v42 }
  0xdf   :  { %v583_v58 = vadd.f32 0.112945676, %v582_v53  ;;  %v608_v59 = vadd.f32 0.00028619796, %v607_v55  ;;  %v619_v60 = vadd.f32 0.001143296, %v618_v56 }
  0xe0   :  { %v572_v8 = vadd.f32 0.05243302, %v571_v1  ;;  %v561_v56 = vmul.f32 0.5, %v1465_v29  ;;  %v1304_v1 = vld [vmem:[%s1581_s5 + $0x30] sm:$0xff] }
  0xe1   :  { %v584_v61 = vmul.f32 %v583_v58, %v566_v37  ;;  %v609_v63 = vmul.f32 %v608_v59, %v606_v52  ;;  %v620_v0 = vmul.f32 %v619_v60, %v606_v52 }
  0xe2   :  { %v573_v14 = vmul.f32 %v572_v8, %v566_v37 }
  0xe3   :  { %v585_v2 = vadd.f32 0.4994258, %v584_v61  ;;  %v610_v4 = vadd.f32 0.0036580483, %v609_v63  ;;  %v621_v5 = vadd.f32 0.014752088, %v620_v0 }
  0xe4   :  { %v574_v19 = vadd.f32 0.18741608, %v573_v14  ;;  %v1305_v0 = vld [vmem:[%s1581_s5 + $0x38] sm:$0xff] }
  0xe5   :  { %v586_v6 = vmul.f32 %v585_v2, %v566_v37  ;;  %v622_v7 = vmul.f32 %v621_v5, %v606_v52  ;;  %v611_v11 = vmul.f32 %v610_v4, %v606_v52  ;;  %889 = vmatpush.bf16.msrb.mxu3 %v1305_v0 }
  0xe6   :  { %v575_v24 = vmul.f32 %v574_v19, %v566_v37 }
  0xe7   :  { %v587_v9 = vadd.f32 1.0, %v586_v6  ;;  %v623_v12 = vadd.f32 0.112945676, %v622_v7  ;;  %v612_v15 = vadd.f32 0.05243302, %v611_v11  ;;  %v1303_v7 = vld [vmem:[%s1581_s5 + $0x28] sm:$0xff] }
  0xe8   :  { %v576_v31 = vadd.f32 1.1283791, %v575_v24 }
  0xe9   :  { %1316 = vrcp.f32 %v587_v9  ;;  %v624_v13 = vmul.f32 %v623_v12, %v606_v52  ;;  %v613_v21 = vmul.f32 %v612_v15, %v606_v52  ;;  %v599_v26 = vand.u32 2147483648, %v587_v9  ;;  %890 = vmatpush.bf16.msrb.mxu3 %v1304_v1  ;;  %v1302_v12 = vld [vmem:[%s1581_s5 + $0x20] sm:$0xff] }
  0xea   :  { %v597_v28 = vand.u32 2147483647, %v587_v9  ;;  %vm593_vm3 = vweird.f32 %v587_v9  ;;  %v577_v40 = vmul.f32 %v576_v31, %v1471_v32 }
  0xeb   :  { %v625_v16 = vadd.f32 0.4994258, %v624_v13  ;;  %v614_v27 = vadd.f32 0.18741608, %v613_v21  ;;  %v600_v35 = vor.u32 1.1754944e-38, %v599_v26  ;;  %v1300_v26 = vld [vmem:[%s1581_s5 + $0x10] sm:$0xff] }
  0xec   :  { %vm598_vm5 = vcmp.eq.f32.partialorder %v597_v28, 8.507059e+37 }
  0xed   :  { %v626_v17 = vmul.f32 %v625_v16, %v606_v52  ;;  %v615_v36 = vmul.f32 %v614_v27, %v606_v52  ;;  %891 = vmatpush.bf16.msrb.mxu3 %v1303_v7 }
  0xef   :  { %v1317_v18 = vpop.eup %1316  ;;  %v627_v22 = vadd.f32 1.0, %v626_v17  ;;  %v616_v37 = vadd.f32 1.1283791, %v615_v36  ;;  %v1299_v36 = vld [vmem:[%s1581_s5 + $0x8] sm:$0xff] }
  0xf0   :  { %v589_v20 = vmul.f32 %v1317_v18, %v587_v9  ;;  %vm594_vm2 = vweird.f32 %v1317_v18 }
  0xf1   :  { %1318 = vrcp.f32 %v627_v22  ;;  %vm595_vm4 = vmor %vm593_vm3, %vm594_vm2  ;;  %v639_v43 = vand.u32 2147483648, %v627_v22  ;;  %v637_v47 = vand.u32 2147483647, %v627_v22  ;;  %vm633_vm7 = vweird.f32 %v627_v22  ;;  %892 = vmatpush.bf16.msrb.mxu3 %v1302_v12 }
  0xf2   :  { %v590_v23 = vsub.f32 1.0, %v589_v20  ;;  %v617_v50 = vmul.f32 %v616_v37, %v1484_v46  ;;  %v1314_v46 = vld [vmem:[%s1580_s4] ss:$0 sm:$0xff] }
  0xf3   :  { %v640_v49 = vor.u32 1.1754944e-38, %v639_v43  ;;  %vm638_vm9 = vcmp.eq.f32.partialorder %v637_v47, 8.507059e+37  ;;  %v1298_v43 = vld [vmem:[%s1581_s5] sm:$0xff] }
  0xf4   :  { %v591_v25 = vmul.f32 %v1317_v18, %v590_v23 }
  0xf6   :  { %v592_v30 = vadd.f32 %v1317_v18, %v591_v25 }
  0xf7   :  { %v1319_v33 = vpop.eup %1318 }
  0xf8   :  { %v596_v34 = vsel %vm595_vm4, %v1317_v18, %v592_v30  ;;  %v629_v38 = vmul.f32 %v1319_v33, %v627_v22  ;;  %vm634_vm6 = vweird.f32 %v1319_v33  ;;  %v1301_v18 = vld [vmem:[%s1581_s5 + $0x18] sm:$0xff] }
  0xf9   :  { %v601_v39 = vsel %vm598_vm5, %v600_v35, %v596_v34  ;;  %vm635_vm8 = vmor %vm633_vm7, %vm634_vm6  ;;  %893 = vmatpush.bf16.msrb.mxu3 %v1301_v18  ;;  %vm991_vm7 = vcmask 146432  }
  0xfa   :  { %v630_v41 = vsub.f32 1.0, %v629_v38  ;;  %v602_v44 = vmul.f32 %v601_v39, %v577_v40 }
  0xfc   :  { %v631_v45 = vmul.f32 %v1319_v33, %v630_v41  ;;  %v1179_v52 = vclamps-f32 %v602_v44, 1.0 }
  0xfd   :  { %894 = vmatpush.bf16.msrb.mxu3 %v1300_v26  ;;  %v1315_v26 = vld [vmem:[%s1582_s6] ss:$0 sm:$0xff] }
  0xfe   :  { %v632_v48 = vadd.f32 %v1319_v33, %v631_v45  ;;  %v645_v32 = vadd.f32 1.0, %v1179_v52 }
 0x100   :  { %v636_v51 = vsel %vm635_vm8, %v1319_v33, %v632_v48  ;;  %v647_v59 = vmul.f32 %v645_v32, %v561_v56 }
 0x101   :  { %v641_v53 = vsel %vm638_vm9, %v640_v49, %v636_v51  ;;  %895 = vmatpush.bf16.msrb.mxu3 %v1299_v36 }
 0x102   :  { %v642_v54 = vmul.f32 %v641_v53, %v617_v50 }
 0x104   :  { %v1180_v55 = vclamps-f32 %v642_v54, 1.0 }
 0x105   :  { %896 = vmatpush.bf16.msrb.mxu3 %v1298_v43 }
 0x106   :  { %v646_v58 = vadd.f32 1.0, %v1180_v55 }
 0x108   :  { %v648_v60 = vmul.f32 %v646_v58, %v562_v57 }
 0x10a   :  { %v649_v61 = vpack.c.bf16 %v648_v60, %v647_v59 }
 0x10c   :  { %726 = vmatmul.bf16.vlgmr.msrb.gmra.mxu2 %v649_v61 }
 0x18f   :  { %v727_v62 = vpop.f32.mrf.mxu2 }
 0x190   :  { %v1510_v63 = vadd.f32 %v1314_v46, %v727_v62 }
 0x192   :  { %v1516_v29 = vmul.f32 0.70710677, %v1510_v63 }
 0x194   :  { %v736_v42 = vmul.f32 %v1516_v29, %v1516_v29 }
 0x196   :  { %v737_v2 = vmin.f32 %v736_v42, 16.0 }
 0x197   :  { %v729_v3 = vpop.f32.mrf.mxu2 }
 0x198   :  { %v738_v4 = vmul.f32 2.1237322e-06, %v737_v2  ;;  %v749_v5 = vmul.f32 3.8918573e-05, %v737_v2  ;;  %v1523_v6 = vadd.f32 %v1314_v46, %v729_v3 }
 0x19a   :  { %v739_v8 = vadd.f32 0.00028619796, %v738_v4  ;;  %v750_v9 = vadd.f32 0.001143296, %v749_v5  ;;  %v1529_v10 = vmul.f32 0.70710677, %v1523_v6 }
 0x19c   :  { %v751_v11 = vmul.f32 %v750_v9, %v737_v2  ;;  %v776_v13 = vmul.f32 %v1529_v10, %v1529_v10  ;;  %v740_v14 = vmul.f32 %v739_v8, %v737_v2 }
 0x19e   :  { %v752_v15 = vadd.f32 0.014752088, %v751_v11  ;;  %v777_v16 = vmin.f32 %v776_v13, 16.0  ;;  %v741_v21 = vadd.f32 0.0036580483, %v740_v14 }
 0x1a0   :  { %v753_v17 = vmul.f32 %v752_v15, %v737_v2  ;;  %v778_v19 = vmul.f32 2.1237322e-06, %v777_v16  ;;  %v789_v20 = vmul.f32 3.8918573e-05, %v777_v16  ;;  %v742_v30 = vmul.f32 %v741_v21, %v737_v2 }
 0x1a1   :  { %v733_v21 = vmul.f32 0.5, %v1523_v6 }
 0x1a2   :  { %v754_v22 = vadd.f32 0.112945676, %v753_v17  ;;  %v779_v23 = vadd.f32 0.00028619796, %v778_v19  ;;  %v790_v24 = vadd.f32 0.001143296, %v789_v20 }
 0x1a3   :  { %v743_v39 = vadd.f32 0.05243302, %v742_v30  ;;  %v732_v20 = vmul.f32 0.5, %v1510_v63 }
 0x1a4   :  { %v755_v25 = vmul.f32 %v754_v22, %v737_v2  ;;  %v780_v27 = vmul.f32 %v779_v23, %v777_v16  ;;  %v791_v28 = vmul.f32 %v790_v24, %v777_v16 }
 0x1a5   :  { %v744_v45 = vmul.f32 %v743_v39, %v737_v2 }
 0x1a6   :  { %v756_v31 = vadd.f32 0.4994258, %v755_v25  ;;  %v781_v33 = vadd.f32 0.0036580483, %v780_v27  ;;  %v792_v34 = vadd.f32 0.014752088, %v791_v28 }
 0x1a7   :  { %v745_v51 = vadd.f32 0.18741608, %v744_v45 }
 0x1a8   :  { %v757_v35 = vmul.f32 %v756_v31, %v737_v2  ;;  %v793_v38 = vmul.f32 %v792_v34, %v777_v16  ;;  %v782_v41 = vmul.f32 %v781_v33, %v777_v16 }
 0x1a9   :  { %v746_v32 = vmul.f32 %v745_v51, %v737_v2 }
 0x1aa   :  { %v758_v40 = vadd.f32 1.0, %v757_v35  ;;  %v794_v37 = vadd.f32 0.112945676, %v793_v38  ;;  %v783_v47 = vadd.f32 0.05243302, %v782_v41 }
 0x1ab   :  { %v747_v61 = vadd.f32 1.1283791, %v746_v32 }
 0x1ac   :  { %1320 = vrcp.f32 %v758_v40  ;;  %v795_v44 = vmul.f32 %v794_v37, %v777_v16  ;;  %v784_v53 = vmul.f32 %v783_v47, %v777_v16  ;;  %v770_v57 = vand.u32 2147483648, %v758_v40 }
 0x1ad   :  { %v768_v59 = vand.u32 2147483647, %v758_v40  ;;  %vm764_vm11 = vweird.f32 %v758_v40  ;;  %v748_v4 = vmul.f32 %v747_v61, %v1516_v29 }
 0x1ae   :  { %v796_v48 = vadd.f32 0.4994258, %v795_v44  ;;  %v785_v58 = vadd.f32 0.18741608, %v784_v53  ;;  %v771_v0 = vor.u32 1.1754944e-38, %v770_v57 }
 0x1af   :  { %vm769_vm13 = vcmp.eq.f32.partialorder %v768_v59, 8.507059e+37 }
 0x1b0   :  { %v797_v49 = vmul.f32 %v796_v48, %v777_v16  ;;  %v786_v42 = vmul.f32 %v785_v58, %v777_v16 }
 0x1b2   :  { %v1321_v50 = vpop.eup %1320  ;;  %v798_v54 = vadd.f32 1.0, %v797_v49  ;;  %v787_v2 = vadd.f32 1.1283791, %v786_v42 }
 0x1b3   :  { %v760_v52 = vmul.f32 %v1321_v50, %v758_v40  ;;  %vm765_vm10 = vweird.f32 %v1321_v50 }
 0x1b4   :  { %1322 = vrcp.f32 %v798_v54  ;;  %vm766_vm12 = vmor %vm764_vm11, %vm765_vm10  ;;  %v810_v7 = vand.u32 2147483648, %v798_v54  ;;  %v808_v11 = vand.u32 2147483647, %v798_v54  ;;  %vm804_vm15 = vweird.f32 %v798_v54 }
 0x1b5   :  { %v761_v55 = vsub.f32 1.0, %v760_v52  ;;  %v788_v15 = vmul.f32 %v787_v2, %v1529_v10 }
 0x1b6   :  { %v811_v13 = vor.u32 1.1754944e-38, %v810_v7  ;;  %vm809_vm1 = vcmp.eq.f32.partialorder %v808_v11, 8.507059e+37 }
 0x1b7   :  { %v762_v56 = vmul.f32 %v1321_v50, %v761_v55 }
 0x1b9   :  { %v763_v60 = vadd.f32 %v1321_v50, %v762_v56 }
 0x1ba   :  { %v1323_v46 = vpop.eup %1322 }
 0x1bb   :  { %v767_v62 = vsel %vm766_vm12, %v1321_v50, %v763_v60  ;;  %v800_v1 = vmul.f32 %v1323_v46, %v798_v54  ;;  %vm805_vm14 = vweird.f32 %v1323_v46 }
 0x1bc   :  { %v772_v3 = vsel %vm769_vm13, %v771_v0, %v767_v62  ;;  %vm806_vm0 = vmor %vm804_vm15, %vm805_vm14 }
 0x1bd   :  { %v801_v5 = vsub.f32 1.0, %v800_v1  ;;  %v773_v8 = vmul.f32 %v772_v3, %v748_v4 }
 0x1bf   :  { %v802_v9 = vmul.f32 %v1323_v46, %v801_v5  ;;  %v1213_v14 = vclamps-f32 %v773_v8, 1.0 }
 0x1c1   :  { %v803_v12 = vadd.f32 %v1323_v46, %v802_v9  ;;  %v816_v19 = vadd.f32 1.0, %v1213_v14 }
 0x1c3   :  { %v807_v16 = vsel %vm806_vm0, %v1323_v46, %v803_v12  ;;  %v818_v23 = vmul.f32 %v816_v19, %v732_v20 }
 0x1c4   :  { %v812_v17 = vsel %vm809_vm1, %v811_v13, %v807_v16 }
 0x1c5   :  { %v813_v18 = vmul.f32 %v812_v17, %v788_v15 }
 0x1c7   :  { %v1214_v29 = vclamps-f32 %v813_v18, 1.0 }
 0x1c9   :  { %v817_v22 = vadd.f32 1.0, %v1214_v29 }
 0x1cb   :  { %v819_v24 = vmul.f32 %v817_v22, %v733_v21 }
 0x1cd   :  { %v820_v25 = vpack.c.bf16 %v819_v24, %v818_v23 }
 0x1cf   :  { %897 = vmatmul.bf16.vlgmr.msrb.gmra.mxu3 %v820_v25 }
 0x252   :  { %v898_v10 = vpop.f32.mrf.mxu3 }
 0x253   :  { %v1555_v27 = vadd.f32 %v1315_v26, %v898_v10 }
 0x255   :  { %v905_v28 = vmul.f32 0.70710677, %v1555_v27 }
 0x257   :  { %v907_v30 = vmul.f32 %v905_v28, %v905_v28 }
 0x259   :  { %v908_v31 = vmin.f32 %v907_v30, 16.0 }
 0x25a   :  { %v900_v33 = vpop.f32.mrf.mxu3 }
 0x25b   :  { %v909_v63 = vmul.f32 2.1237322e-06, %v908_v31  ;;  %v920_v34 = vmul.f32 3.8918573e-05, %v908_v31  ;;  %v1558_v6 = vadd.f32 %v1315_v26, %v900_v33 }
 0x25d   :  { %v910_v35 = vadd.f32 0.00028619796, %v909_v63  ;;  %v921_v36 = vadd.f32 0.001143296, %v920_v34  ;;  %v1561_v38 = vmul.f32 0.70710677, %v1558_v6 }
 0x25e   :  { %v903_v34 = vmul.f32 0.5, %v1555_v27 }
 0x25f   :  { %v911_v39 = vmul.f32 %v910_v35, %v908_v31  ;;  %v922_v40 = vmul.f32 %v921_v36, %v908_v31  ;;  %v947_v41 = vmul.f32 %v1561_v38, %v1561_v38 }
 0x261   :  { %v923_v37 = vadd.f32 0.014752088, %v922_v40  ;;  %v912_v43 = vadd.f32 0.0036580483, %v911_v39  ;;  %v948_v44 = vmin.f32 %v947_v41, 16.0 }
 0x263   :  { %v924_v45 = vmul.f32 %v923_v37, %v908_v31  ;;  %v949_v47 = vmul.f32 2.1237322e-06, %v948_v44  ;;  %v960_v48 = vmul.f32 3.8918573e-05, %v948_v44  ;;  %v913_v50 = vmul.f32 %v912_v43, %v908_v31 }
 0x265   :  { %v925_v49 = vadd.f32 0.112945676, %v924_v45  ;;  %v950_v51 = vadd.f32 0.00028619796, %v949_v47  ;;  %v961_v52 = vadd.f32 0.001143296, %v960_v48 }
 0x266   :  { %v914_v56 = vadd.f32 0.05243302, %v913_v50  ;;  %v904_v45 = vmul.f32 0.5, %v1558_v6 }
 0x267   :  { %v926_v53 = vmul.f32 %v925_v49, %v908_v31  ;;  %v951_v54 = vmul.f32 %v950_v51, %v948_v44  ;;  %v962_v55 = vmul.f32 %v961_v52, %v948_v44 }
 0x268   :  { %v915_v46 = vmul.f32 %v914_v56, %v908_v31 }
 0x269   :  { %v927_v32 = vadd.f32 0.4994258, %v926_v53  ;;  %v963_v57 = vadd.f32 0.014752088, %v962_v55  ;;  %v952_v59 = vadd.f32 0.0036580483, %v951_v54 }
 0x26a   :  { %v916_v1 = vadd.f32 0.18741608, %v915_v46 }
 0x26b   :  { %v928_v58 = vmul.f32 %v927_v32, %v908_v31  ;;  %v964_v60 = vmul.f32 %v963_v57, %v948_v44  ;;  %v953_v0 = vmul.f32 %v952_v59, %v948_v44 }
 0x26c   :  { %v917_v7 = vmul.f32 %v916_v1, %v908_v31 }
 0x26d   :  { %v929_v61 = vadd.f32 1.0, %v928_v58  ;;  %v965_v62 = vadd.f32 0.112945676, %v964_v60  ;;  %v954_v4 = vadd.f32 0.05243302, %v953_v0 }
 0x26e   :  { %v918_v14 = vadd.f32 1.1283791, %v917_v7 }
 0x26f   :  { %1324 = vrcp.f32 %v929_v61  ;;  %v966_v42 = vmul.f32 %v965_v62, %v948_v44  ;;  %v955_v11 = vmul.f32 %v954_v4, %v948_v44  ;;  %v941_v13 = vand.u32 2147483648, %v929_v61 }
 0x270   :  { %v939_v16 = vand.u32 2147483647, %v929_v61  ;;  %vm935_vm3 = vweird.f32 %v929_v61  ;;  %v919_v20 = vmul.f32 %v918_v14, %v905_v28 }
 0x271   :  { %v967_v3 = vadd.f32 0.4994258, %v966_v42  ;;  %v956_v17 = vadd.f32 0.18741608, %v955_v11  ;;  %v942_v19 = vor.u32 1.1754944e-38, %v941_v13 }
 0x272   :  { %vm940_vm5 = vcmp.eq.f32.partialorder %v939_v16, 8.507059e+37 }
 0x273   :  { %v968_v5 = vmul.f32 %v967_v3, %v948_v44  ;;  %v957_v23 = vmul.f32 %v956_v17, %v948_v44 }
 0x275   :  { %v1325_v2 = vpop.eup %1324  ;;  %v969_v9 = vadd.f32 1.0, %v968_v5  ;;  %v958_v31 = vadd.f32 1.1283791, %v957_v23 }
 0x276   :  { %v931_v8 = vmul.f32 %v1325_v2, %v929_v61  ;;  %vm936_vm2 = vweird.f32 %v1325_v2 }
 0x277   :  { %1326 = vrcp.f32 %v969_v9  ;;  %vm937_vm4 = vmor %vm935_vm3, %vm936_vm2  ;;  %v981_v30 = vand.u32 2147483648, %v969_v9  ;;  %v979_v63 = vand.u32 2147483647, %v969_v9  ;;  %vm975_vm8 = vweird.f32 %v969_v9 }
 0x278   :  { %v932_v12 = vsub.f32 1.0, %v931_v8  ;;  %v959_v40 = vmul.f32 %v958_v31, %v1561_v38 }
 0x279   :  { %v982_v39 = vor.u32 1.1754944e-38, %v981_v30  ;;  %vm980_vm10 = vcmp.eq.f32.partialorder %v979_v63, 8.507059e+37 }
 0x27a   :  { %v933_v15 = vmul.f32 %v1325_v2, %v932_v12 }
 0x27c   :  { %v934_v18 = vadd.f32 %v1325_v2, %v933_v15 }
 0x27d   :  { %v1327_v29 = vpop.eup %1326 }
 0x27e   :  { %v938_v21 = vsel %vm937_vm4, %v1325_v2, %v934_v18  ;;  %v971_v24 = vmul.f32 %v1327_v29, %v969_v9  ;;  %vm976_vm6 = vweird.f32 %v1327_v29 }
 0x27f   :  { %v943_v22 = vsel %vm940_vm5, %v942_v19, %v938_v21  ;;  %vm977_vm9 = vmor %vm975_vm8, %vm976_vm6 }
 0x280   :  { %v944_v25 = vmul.f32 %v943_v22, %v919_v20  ;;  %v972_v26 = vsub.f32 1.0, %v971_v24 }
 0x282   :  { %v1247_v10 = vclamps-f32 %v944_v25, 1.0  ;;  %v973_v33 = vmul.f32 %v1327_v29, %v972_v26 }
 0x284   :  { %v987_v35 = vadd.f32 1.0, %v1247_v10  ;;  %v974_v36 = vadd.f32 %v1327_v29, %v973_v33 }
 0x286   :  { %v989_v28 = vmul.f32 %v987_v35, %v903_v34  ;;  %v978_v41 = vsel %vm977_vm9, %v1327_v29, %v974_v36 }
 0x287   :  { %v983_v37 = vsel %vm980_vm10, %v982_v39, %v978_v41 }
 0x288   :  { %992 = vst.msk [vmem:[#allocation7] sm:$0xff] %vm991_vm7, %v989_v28  ;;  %v984_v43 = vmul.f32 %v983_v37, %v959_v40 }
 0x28a   :  { %v1248_v44 = vclamps-f32 %v984_v43, 1.0 }
 0x28c   :  { %v988_v47 = vadd.f32 1.0, %v1248_v44 }
 0x28e   :  { %v990_v27 = vmul.f32 %v988_v47, %v904_v45 }
 0x290   :  { %993 = vst.msk [vmem:[#allocation7 + $0x8] sm:$0xff] %vm991_vm7, %v990_v27 }
 0x291   :  { %997 = vsyncadd [#allocation4], 192  ;;  %s1000_s24 = sshll.u32 %s1583_s7, 4  ;;  %s1412_s25 = smov [#allocation7]   ;;  %s1001_s24 = int_to_ptr.hbm [resolvable:$true] %s1000_s24 }
 0x292   :  { %s998_s26 = sshll.u32 %s1412_s25, 4  ;;  %s999_s26 = int_to_ptr.vmem [resolvable:$true] %s998_s26 }
 0x293   :  { %1006 = dma.vmem_to_hbm [thread:$0]  %s999_s26, 64, %s1001_s24, [#allocation4], %s1410_s13, %s1410_s13, %s1411_s14  }
 0x294   :  { %1404 = dma.done.wait [#allocation4], 256  }
 0x295   :  { %1405 = vsyncadd [#allocation4], 4294967040 }
 0x296   :  { %1011 = vsyncpa [#allocation3], 1 }
 0x297   :  { %1012 = vsyncpa [#allocation6], 1 }
 0x298   :  { %1013 = vsyncpa [#allocation4], 1 }

</bundles_post_ra>
